<compile_context>
chip_gen: v7x
topology: tpu7x:2x2x1
jax: 0.10.0
libtpu: 0.0.40
codegen_flags: <defaults>
</compile_context>

<pallas_src>
import functools

import jax
import jax.numpy as jnp
from jax.experimental import pallas as pl
from jax.experimental.pallas import tpu as pltpu

INPUT_SIZE = 784
HIDDEN_SIZE = 500
NUM_CLASSES = 10

# Lane-dense (128-multiple) padded storage sizes.
HIDDEN_PAD = 512   # 500 -> 512
OUT_PAD = 128      # 10  -> 128


def _round_up(x, m):
    return ((x + m - 1) // m) * m


def mlp_kernel(x_ref, w1_ref, b1_ref, w2_ref, b2_ref, o_ref):
    # fc1: (TB, 784) bf16 @ (784, 512) bf16 -> f32 accumulation on the MXU.
    h = jnp.dot(x_ref[...], w1_ref[...], preferred_element_type=jnp.float32)
    # Bias + ReLU in f32 on the VPU (v5e has no bf16 VPU; padded cols have
    # zero bias so relu(0 + 0) == 0 and they contribute nothing to fc2).
    h = jnp.maximum(h + b1_ref[...], 0.0)
    # fc2: (TB, 512) bf16 @ (512, 128) bf16 -> f32 accumulation.
    out = jnp.dot(h.astype(w2_ref.dtype), w2_ref[...],
                  preferred_element_type=jnp.float32)
    # Lane-dense (TB, 128) f32 store — no masked partial stores.
    o_ref[...] = (out + b2_ref[...]).astype(o_ref.dtype)


def net_forward(x, w1p, b1p, w2p, b2p):
    """x: (B, 784) f32 -> (B, 10) f32.

    w1p: (784, 512) bf16, b1p: (1, 512) f32,
    w2p: (512, 128) bf16, b2p: (1, 128) f32 (zero-padded beyond logical dims).
    """
    B = x.shape[0]
    # Batch tile: large enough to amortize per-step overhead, multiple of 16
    # (safe sublane multiple for bf16), but never bigger than the padded batch.
    TB = min(256, _round_up(max(B, 1), 16))
    B_pad = _round_up(B, TB)

    x_bf = x.astype(jnp.bfloat16)
    if B_pad != B:
        # Zero rows -> their (discarded) outputs are just relu(b1) @ w2 + b2.
        x_bf = jnp.pad(x_bf, ((0, B_pad - B), (0, 0)))

    grid = (B_pad // TB,)

    flops = 2 * B_pad * (INPUT_SIZE * HIDDEN_PAD + HIDDEN_PAD * OUT_PAD)
    bytes_accessed = (
        x_bf.size * 2                 # x (bf16)
        + w1p.size * 2 + w2p.size * 2  # weights (bf16)
        + b1p.size * 4 + b2p.size * 4  # biases (f32)
        + B_pad * OUT_PAD * 4          # output (f32)
    )

    out_pad = pl.pallas_call(
        mlp_kernel,
        out_shape=jax.ShapeDtypeStruct((B_pad, OUT_PAD), jnp.float32),
        grid=grid,
        in_specs=[
            # x: streamed per batch tile (double-buffered by the pipeline).
            pl.BlockSpec((TB, INPUT_SIZE), lambda i: (i, 0)),
            # Weights / biases: same block every step -> VMEM-resident.
            pl.BlockSpec((INPUT_SIZE, HIDDEN_PAD), lambda i: (0, 0)),
            pl.BlockSpec((1, HIDDEN_PAD), lambda i: (0, 0)),
            pl.BlockSpec((HIDDEN_PAD, OUT_PAD), lambda i: (0, 0)),
            pl.BlockSpec((1, OUT_PAD), lambda i: (0, 0)),
        ],
        out_specs=pl.BlockSpec((TB, OUT_PAD), lambda i: (i, 0)),
        compiler_params=pltpu.CompilerParams(
            dimension_semantics=("parallel",),   # megacore-shardable on v7x
            vmem_limit_bytes=32 * 1024 * 1024,   # ~3 MB used; fits v7x easily
        ),
        cost_estimate=pl.CostEstimate(
            flops=flops, transcendentals=0, bytes_accessed=bytes_accessed),
    )(x_bf, w1p, b1p, w2p, b2p)

    # Slice off batch padding and the lane padding of the logits.
    return out_pad[:B, :NUM_CLASSES]


def init_params(key):
    """Logical-size f32 params mimicking nn.Linear's U(-1/sqrt(fan_in), +)."""
    k1, k2, k3, k4 = jax.random.split(key, 4)
    bound1 = 1.0 / jnp.sqrt(jnp.float32(INPUT_SIZE))
    bound2 = 1.0 / jnp.sqrt(jnp.float32(HIDDEN_SIZE))
    # Stored as (in_features, out_features) so the kernel does x @ W.
    w1 = jax.random.uniform(k1, (INPUT_SIZE, HIDDEN_SIZE), jnp.float32,
                            minval=-bound1, maxval=bound1)
    b1 = jax.random.uniform(k2, (1, HIDDEN_SIZE), jnp.float32,
                            minval=-bound1, maxval=bound1)
    w2 = jax.random.uniform(k3, (HIDDEN_SIZE, NUM_CLASSES), jnp.float32,
                            minval=-bound2, maxval=bound2)
    b2 = jax.random.uniform(k4, (1, NUM_CLASSES), jnp.float32,
                            minval=-bound2, maxval=bound2)
    return w1, b1, w2, b2


def pack_params(w1, b1, w2, b2):
    """Zero-pad to lane-dense storage shapes and cast weights to bf16."""
    w1p = jnp.zeros((INPUT_SIZE, HIDDEN_PAD), jnp.float32).at[:, :HIDDEN_SIZE].set(w1)
    b1p = jnp.zeros((1, HIDDEN_PAD), jnp.float32).at[:, :HIDDEN_SIZE].set(b1)
    w2p = jnp.zeros((HIDDEN_PAD, OUT_PAD), jnp.float32).at[:HIDDEN_SIZE, :NUM_CLASSES].set(w2)
    b2p = jnp.zeros((1, OUT_PAD), jnp.float32).at[:, :NUM_CLASSES].set(b2)
    return (w1p.astype(jnp.bfloat16), b1p,
            w2p.astype(jnp.bfloat16), b2p)


if __name__ == "__main__":
    key = jax.random.PRNGKey(0)
    kx, kp = jax.random.split(key)

    batch = 8
    x = jax.random.normal(kx, (batch, INPUT_SIZE), jnp.float32)
    w1, b1, w2, b2 = init_params(kp)
    w1p, b1p, w2p, b2p = pack_params(w1, b1, w2, b2)

    out = net_forward(x, w1p, b1p, w2p, b2p)
    out = jax.block_until_ready(out)
    assert out.shape == (batch, NUM_CLASSES)

    # Reference 1: bf16-matched forward (same rounding as the kernel inputs,
    # f32 accumulation) — should agree tightly with the kernel output.
    def bf(v):
        return v.astype(jnp.bfloat16).astype(jnp.float32)
    h_ref = jnp.maximum(jnp.dot(bf(x), bf(w1)) + b1, 0.0)
    ref_bf16 = jnp.dot(bf(h_ref), bf(w2)) + b2
    assert jnp.allclose(out, ref_bf16, atol=1e-2, rtol=1e-2)

    # Reference 2: full-f32 semantics of the original PyTorch module
    # (looser tolerance — the only difference is bf16 input rounding).
    ref_f32 = jnp.maximum(x @ w1 + b1, 0.0) @ w2 + b2
    assert jnp.allclose(out, ref_f32, atol=5e-2, rtol=5e-2)

    print("KERNEL_OK")
</pallas_src>

<mosaic_0001>
module attributes {stable_mosaic.version = 11 : i64} {
  func.func @mlp_kernel(%arg0: i32, %arg1: memref<16x784xbf16, #tpu.memory_space<vmem>>, %arg2: memref<784x512xbf16, #tpu.memory_space<vmem>>, %arg3: memref<1x512xf32, #tpu.memory_space<vmem>>, %arg4: memref<512x128xbf16, #tpu.memory_space<vmem>>, %arg5: memref<1x128xf32, #tpu.memory_space<vmem>>, %arg6: memref<16x128xf32, #tpu.memory_space<vmem>>) attributes {dimension_semantics = [#tpu.dimension_semantics<parallel>], iteration_bounds = array<i64: 1>, scalar_prefetch = 0 : i64, scratch_operands = 0 : i64, tpu.core_type = #tpu.core_type<tc>, window_params = [{transform_indices = @transform_0, window_bounds = array<i64: 16, 784>}, {pipeline_mode = #tpu.pipeline_mode<synchronous>, transform_indices = @transform_1, window_bounds = array<i64: 784, 512>}, {pipeline_mode = #tpu.pipeline_mode<synchronous>, transform_indices = @transform_2, window_bounds = array<i64: 1, 512>}, {pipeline_mode = #tpu.pipeline_mode<synchronous>, transform_indices = @transform_3, window_bounds = array<i64: 512, 128>}, {pipeline_mode = #tpu.pipeline_mode<synchronous>, transform_indices = @transform_4, window_bounds = array<i64: 1, 128>}, {transform_indices = @transform_5, window_bounds = array<i64: 16, 128>}]} {
    %c0 = arith.constant 0 : index
    %c0_0 = arith.constant 0 : index
    %0 = vector.load %arg1[%c0, %c0_0] : memref<16x784xbf16, #tpu.memory_space<vmem>>, vector<16x784xbf16>
    %c0_1 = arith.constant 0 : index
    %c0_2 = arith.constant 0 : index
    %1 = vector.load %arg2[%c0_1, %c0_2] : memref<784x512xbf16, #tpu.memory_space<vmem>>, vector<784x512xbf16>
    %cst = arith.constant dense<0.000000e+00> : vector<16x512xf32>
    %2 = tpu.matmul %0, %1, %cst {dimension_numbers = #tpu.dot_dimension_numbers<[1], [0], [0], [1], [0, 0, 1, 1], [], []>} : vector<16x784xbf16>, vector<784x512xbf16>, vector<16x512xf32> -> vector<16x512xf32>
    %c0_3 = arith.constant 0 : index
    %c0_4 = arith.constant 0 : index
    %3 = vector.load %arg3[%c0_3, %c0_4] : memref<1x512xf32, #tpu.memory_space<vmem>>, vector<1x512xf32>
    %4 = vector.broadcast %3 : vector<1x512xf32> to vector<16x512xf32>
    %5 = arith.addf %2, %4 : vector<16x512xf32>
    %cst_5 = arith.constant 0.000000e+00 : f32
    %6 = vector.broadcast %cst_5 : f32 to vector<16x512xf32>
    %7 = arith.maximumf %5, %6 : vector<16x512xf32>
    %8 = arith.truncf %7 : vector<16x512xf32> to vector<16x512xbf16>
    %c0_6 = arith.constant 0 : index
    %c0_7 = arith.constant 0 : index
    %9 = vector.load %arg4[%c0_6, %c0_7] : memref<512x128xbf16, #tpu.memory_space<vmem>>, vector<512x128xbf16>
    %cst_8 = arith.constant dense<0.000000e+00> : vector<16x128xf32>
    %10 = tpu.matmul %8, %9, %cst_8 {dimension_numbers = #tpu.dot_dimension_numbers<[1], [0], [0], [1], [0, 0, 1, 1], [], []>} : vector<16x512xbf16>, vector<512x128xbf16>, vector<16x128xf32> -> vector<16x128xf32>
    %c0_9 = arith.constant 0 : index
    %c0_10 = arith.constant 0 : index
    %11 = vector.load %arg5[%c0_9, %c0_10] : memref<1x128xf32, #tpu.memory_space<vmem>>, vector<1x128xf32>
    %12 = vector.broadcast %11 : vector<1x128xf32> to vector<16x128xf32>
    %13 = arith.addf %10, %12 : vector<16x128xf32>
    %c0_11 = arith.constant 0 : index
    %c0_12 = arith.constant 0 : index
    %14 = vector.load %arg6[%c0_11, %c0_12] : memref<16x128xf32, #tpu.memory_space<vmem>>, vector<16x128xf32>
    tpu.vector_store %arg6[%c0_11, %c0_12], %13 {strides = array<i32>} : memref<16x128xf32, #tpu.memory_space<vmem>>, vector<16x128xf32>,
    return
  }
  func.func @transform_0(%arg0: i32) -> (i32, i32) {
    %c0_i32 = arith.constant 0 : i32
    %c0_i32_0 = arith.constant 0 : i32
    return %arg0, %c0_i32 : i32, i32
  }
  func.func @transform_1(%arg0: i32) -> (i32, i32) {
    %c0_i32 = arith.constant 0 : i32
    %c0_i32_0 = arith.constant 0 : i32
    %c0_i32_1 = arith.constant 0 : i32
    return %c0_i32, %c0_i32_0 : i32, i32
  }
  func.func @transform_2(%arg0: i32) -> (i32, i32) {
    %c0_i32 = arith.constant 0 : i32
    %c0_i32_0 = arith.constant 0 : i32
    %c0_i32_1 = arith.constant 0 : i32
    return %c0_i32, %c0_i32_0 : i32, i32
  }
  func.func @transform_3(%arg0: i32) -> (i32, i32) {
    %c0_i32 = arith.constant 0 : i32
    %c0_i32_0 = arith.constant 0 : i32
    %c0_i32_1 = arith.constant 0 : i32
    return %c0_i32, %c0_i32_0 : i32, i32
  }
  func.func @transform_4(%arg0: i32) -> (i32, i32) {
    %c0_i32 = arith.constant 0 : i32
    %c0_i32_0 = arith.constant 0 : i32
    %c0_i32_1 = arith.constant 0 : i32
    return %c0_i32, %c0_i32_0 : i32, i32
  }
  func.func @transform_5(%arg0: i32) -> (i32, i32) {
    %c0_i32 = arith.constant 0 : i32
    %c0_i32_0 = arith.constant 0 : i32
    return %arg0, %c0_i32 : i32, i32
  }
}

</mosaic_0001>

<bundles_post_ra>
// kernel: tpu_custom_call.1
= control target key start
LH: loop header
LB: loop body
LE: loop exit
PB: predicated region body
PF: predicated region fallthrough
CT: control target
= control target key end

     0   :  { %10 = vsyncpa [#allocation3], 0  ;;  %s2883_s0 = inlined_call_operand.hbm [shape: bf16[16,784], index: 0, kind: input, shape index: {}]   ;;  %s2884_s1 = inlined_call_operand.hbm [shape: bf16[784,512], index: 1, kind: input, shape index: {}]   ;;  %s2885_s2 = inlined_call_operand.vmem [shape: f32[1,512], index: 2, kind: input, shape index: {}]   ;;  %s2886_s3 = inlined_call_operand.hbm [shape: bf16[512,128], index: 3, kind: input, shape index: {}]   ;;  %s2887_s4 = inlined_call_operand.vmem [shape: f32[1,128], index: 4, kind: input, shape index: {}]   ;;  %s2888_s5 = inlined_call_operand.hbm [shape: f32[16,128], index: 5, kind: output, shape index: {}]  }
   0x1   :  { %11 = vsyncpa [#allocation6], 0 }
   0x2   :  { %12 = vsyncpa [#allocation4], 0  ;;  %s2786_s18 = smov [#allocation5]   ;;  %s2692_s22 = scalar_lea.hbm %s2884_s1, 25088 }
   0x3   :  { %s30_s19 = sshll.u32 %s2786_s18, 4  ;;  %p2693_p0 = scmp.ne.s32.totalorder %s2884_s1, %s2692_s22  ;;  %s31_s19 = int_to_ptr.vmem [resolvable:$true] %s30_s19 }
   0x4   :  { %p2696_p1 = scmp.lt.u32.totalorder %s2692_s22, %s2884_s1 }
   0x6   :  { %p2698_p2 = pnand %p2696_p1, %p2693_p0 }
   0x8   :  { %2701 = shalt.err (!%p2698_p2)
}
   0x9   :  { %s2702_s27 = scalar_lea.vmem %s31_s19, 25088  ;;  %p2707_p4 = scmp.lt.s32.totalorder %s31_s19, %s31_s19 }
   0xa   :  { %p2703_p3 = scmp.ne.s32.totalorder %s31_s19, %s2702_s27  ;;  %p2708_p5 = scmp.lt.s32.totalorder %s2702_s27, %s2702_s27 }
   0xc   :  { %p2709_p6 = por %p2708_p5, %p2707_p4 }
   0xe   :  { %p2710_p7 = pnand %p2709_p6, %p2703_p3 }
  0x10   :  { %2713 = shalt.err (!%p2710_p7)
}
  0x11   :  { %s2787_s28 = smov 256   ;;  %s2788_s29 = smov 16  }
  0x12   :  { %36 = dma.hbm_to_vmem [thread:$0]  %s2884_s1, 25088, %s31_s19, [#allocation6], %s2787_s28, %s2787_s28, %s2788_s29  }
  0x13   :  { %s2789_s7 = smov [#allocation2]   ;;  %s2714_s11 = scalar_lea.hbm %s2883_s0, 896 }
  0x14   :  { %s18_s8 = sshll.u32 %s2789_s7, 4  ;;  %p2715_p8 = scmp.ne.s32.totalorder %s2883_s0, %s2714_s11  ;;  %s19_s8 = int_to_ptr.vmem [resolvable:$true] %s18_s8 }
  0x15   :  { %p2718_p9 = scmp.lt.u32.totalorder %s2714_s11, %s2883_s0 }
  0x17   :  { %p2720_p10 = pnand %p2718_p9, %p2715_p8 }
  0x19   :  { %2723 = shalt.err (!%p2720_p10)
}
  0x1a   :  { %s2724_s16 = scalar_lea.vmem %s19_s8, 896  ;;  %p2729_p12 = scmp.lt.s32.totalorder %s19_s8, %s19_s8 }
  0x1b   :  { %p2725_p11 = scmp.ne.s32.totalorder %s19_s8, %s2724_s16  ;;  %p2730_p13 = scmp.lt.s32.totalorder %s2724_s16, %s2724_s16 }
  0x1d   :  { %p2731_p0 = por %p2730_p13, %p2729_p12 }
  0x1f   :  { %p2732_p1 = pnand %p2731_p0, %p2725_p11 }
  0x21   :  { %2735 = shalt.err (!%p2732_p1)
}
  0x22   :  { %s2790_s1 = smov 448   ;;  %s2791_s17 = smov 28  }
  0x23   :  { %24 = dma.hbm_to_vmem [thread:$0]  %s2883_s0, 896, %s19_s8, [#allocation3], %s2790_s1, %s2790_s1, %s2791_s17  }
  0x24   :  { %s2792_s20 = smov [#allocation7]   ;;  %s2736_s24 = scalar_lea.hbm %s2886_s3, 4096 }
  0x25   :  { %s44_s21 = sshll.u32 %s2792_s20, 4  ;;  %p2737_p2 = scmp.ne.s32.totalorder %s2886_s3, %s2736_s24  ;;  %s45_s21 = int_to_ptr.vmem [resolvable:$true] %s44_s21 }
  0x26   :  { %p2740_p3 = scmp.lt.u32.totalorder %s2736_s24, %s2886_s3 }
  0x28   :  { %p2742_p4 = pnand %p2740_p3, %p2737_p2 }
  0x2a   :  { %2745 = shalt.err (!%p2742_p4)
}
  0x2b   :  { %s2746_s29 = scalar_lea.vmem %s45_s21, 4096  ;;  %p2751_p6 = scmp.lt.s32.totalorder %s45_s21, %s45_s21 }
  0x2c   :  { %p2747_p5 = scmp.ne.s32.totalorder %s45_s21, %s2746_s29  ;;  %p2752_p7 = scmp.lt.s32.totalorder %s2746_s29, %s2746_s29 }
  0x2e   :  { %p2753_p8 = por %p2752_p7, %p2751_p6 }
  0x30   :  { %p2754_p9 = pnand %p2753_p8, %p2747_p5 }
  0x32   :  { %2757 = shalt.err (!%p2754_p9)
}
  0x33   :  { %s2793_s0 = smov 64   ;;  %s2794_s30 = smov 4  }
  0x34   :  { %50 = dma.hbm_to_vmem [thread:$0]  %s2886_s3, 4096, %s45_s21, [#allocation6], %s2793_s0, %s2793_s0, %s2794_s30  }
  0x35   :  { %2780 = dma.done.wait [#allocation3], 896  }
  0x36   :  { %2781 = vsyncadd [#allocation3], 4294966400 }
  0x37   :  { %2782 = dma.done.wait [#allocation6], 29184  }
  0x38   :  { %2783 = vsyncadd [#allocation6], 4294938112  ;;  %v2356_v0 = vld [vmem:[#allocation5 + $0x4] ss:$16 sps:$4 sm:$0xff]   ;;  %v2358_v1 = vld [vmem:[#allocation5 + $0xc] ss:$16 sps:$4 sm:$0xff]  }
  0x39   :  { %1308 = vmatprep.subr.bf16.mxu0 %v2356_v0  ;;  %v2360_v2 = vld [vmem:[#allocation5] ss:$16 sps:$4 sm:$0xff]   ;;  %v2361_v3 = vld [vmem:[#allocation5 + $0x8] ss:$16 sps:$4 sm:$0xff]   ;;  %1480 = vmatprep.subr.bf16.mxu1 %v2358_v1  ;;  %v2362_v4 = vld [vmem:[#allocation5 + $0x24] ss:$16 sps:$4 sm:$0xff]  }
  0x3a   :  { %1309 = vmatpush1.bf16.msra.mxu0 %v2360_v2  ;;  %1481 = vmatpush1.bf16.msra.mxu1 %v2361_v3  ;;  %v2364_v5 = vld [vmem:[#allocation5 + $0x2c] ss:$16 sps:$4 sm:$0xff]   ;;  %v2366_v6 = vld [vmem:[#allocation5 + $0x20] ss:$16 sps:$4 sm:$0xff]   ;;  %v2367_v7 = vld [vmem:[#allocation5 + $0x28] ss:$16 sps:$4 sm:$0xff]  }
  0x3b   :  { %1310 = vmatprep.subr.bf16.mxu0 %v2362_v4  ;;  %1482 = vmatprep.subr.bf16.mxu1 %v2364_v5  ;;  %v2368_v8 = vld [vmem:[#allocation5 + $0x44] ss:$16 sps:$4 sm:$0xff]   ;;  %v2370_v9 = vld [vmem:[#allocation5 + $0x4c] ss:$16 sps:$4 sm:$0xff]   ;;  %v2372_v10 = vld [vmem:[#allocation5 + $0x40] ss:$16 sps:$4 sm:$0xff]  }
  0x3c   :  { %v2373_v11 = vld [vmem:[#allocation5 + $0x48] ss:$16 sps:$4 sm:$0xff]   ;;  %v2374_v12 = vld [vmem:[#allocation5 + $0x64] ss:$16 sps:$4 sm:$0xff]   ;;  %v2376_v13 = vld [vmem:[#allocation5 + $0x6c] ss:$16 sps:$4 sm:$0xff]  }
  0x3d   :  { %v2378_v14 = vld [vmem:[#allocation5 + $0x60] ss:$16 sps:$4 sm:$0xff]   ;;  %v2379_v15 = vld [vmem:[#allocation5 + $0x68] ss:$16 sps:$4 sm:$0xff]   ;;  %v2380_v16 = vld [vmem:[#allocation5 + $0x84] ss:$16 sps:$4 sm:$0xff]  }
  0x3e   :  { %1311 = vmatpush1.bf16.msra.mxu0 %v2366_v6  ;;  %1483 = vmatpush1.bf16.msra.mxu1 %v2367_v7  ;;  %v2382_v17 = vld [vmem:[#allocation5 + $0x8c] ss:$16 sps:$4 sm:$0xff]   ;;  %v2384_v18 = vld [vmem:[#allocation5 + $0x80] ss:$16 sps:$4 sm:$0xff]   ;;  %v2385_v19 = vld [vmem:[#allocation5 + $0x88] ss:$16 sps:$4 sm:$0xff]  }
  0x3f   :  { %1312 = vmatprep.subr.bf16.mxu0 %v2368_v8  ;;  %1484 = vmatprep.subr.bf16.mxu1 %v2370_v9  ;;  %v2386_v20 = vld [vmem:[#allocation5 + $0xa4] ss:$16 sps:$4 sm:$0xff]   ;;  %v2388_v21 = vld [vmem:[#allocation5 + $0xac] ss:$16 sps:$4 sm:$0xff]   ;;  %v2390_v22 = vld [vmem:[#allocation5 + $0xa0] ss:$16 sps:$4 sm:$0xff]  }
  0x40   :  { %v2391_v23 = vld [vmem:[#allocation5 + $0xa8] ss:$16 sps:$4 sm:$0xff]   ;;  %v2392_v24 = vld [vmem:[#allocation5 + $0xc4] ss:$16 sps:$4 sm:$0xff]   ;;  %v2394_v25 = vld [vmem:[#allocation5 + $0xcc] ss:$16 sps:$4 sm:$0xff]  }
  0x41   :  { %v2396_v26 = vld [vmem:[#allocation5 + $0xc0] ss:$16 sps:$4 sm:$0xff]   ;;  %v2397_v27 = vld [vmem:[#allocation5 + $0xc8] ss:$16 sps:$4 sm:$0xff]   ;;  %v2398_v28 = vld [vmem:[#allocation5 + $0xe4] ss:$16 sps:$4 sm:$0xff]  }
  0x42   :  { %1313 = vmatpush1.bf16.msra.mxu0 %v2372_v10  ;;  %1485 = vmatpush1.bf16.msra.mxu1 %v2373_v11  ;;  %v2400_v29 = vld [vmem:[#allocation5 + $0xec] ss:$16 sps:$4 sm:$0xff]   ;;  %v2402_v30 = vld [vmem:[#allocation5 + $0xe0] ss:$16 sps:$4 sm:$0xff]   ;;  %v2403_v31 = vld [vmem:[#allocation5 + $0xe8] ss:$16 sps:$4 sm:$0xff]  }
  0x43   :  { %1314 = vmatprep.subr.bf16.mxu0 %v2374_v12  ;;  %1486 = vmatprep.subr.bf16.mxu1 %v2376_v13  ;;  %v2404_v32 = vld [vmem:[#allocation5 + $0x104] ss:$16 sps:$4 sm:$0xff]   ;;  %v2406_v33 = vld [vmem:[#allocation5 + $0x10c] ss:$16 sps:$4 sm:$0xff]   ;;  %v2408_v34 = vld [vmem:[#allocation5 + $0x100] ss:$16 sps:$4 sm:$0xff]  }
  0x44   :  { %v2409_v35 = vld [vmem:[#allocation5 + $0x108] ss:$16 sps:$4 sm:$0xff]   ;;  %v2410_v36 = vld [vmem:[#allocation5 + $0x124] ss:$16 sps:$4 sm:$0xff]   ;;  %v2412_v37 = vld [vmem:[#allocation5 + $0x12c] ss:$16 sps:$4 sm:$0xff]  }
  0x45   :  { %v2414_v38 = vld [vmem:[#allocation5 + $0x120] ss:$16 sps:$4 sm:$0xff]   ;;  %v2415_v39 = vld [vmem:[#allocation5 + $0x128] ss:$16 sps:$4 sm:$0xff]   ;;  %v2416_v40 = vld [vmem:[#allocation5 + $0x144] ss:$16 sps:$4 sm:$0xff]  }
  0x46   :  { %1315 = vmatpush1.bf16.msra.mxu0 %v2378_v14  ;;  %1487 = vmatpush1.bf16.msra.mxu1 %v2379_v15  ;;  %v2418_v41 = vld [vmem:[#allocation5 + $0x14c] ss:$16 sps:$4 sm:$0xff]   ;;  %v2420_v42 = vld [vmem:[#allocation5 + $0x140] ss:$16 sps:$4 sm:$0xff]   ;;  %v2421_v43 = vld [vmem:[#allocation5 + $0x148] ss:$16 sps:$4 sm:$0xff]  }
  0x47   :  { %1316 = vmatprep.subr.bf16.mxu0 %v2380_v16  ;;  %1488 = vmatprep.subr.bf16.mxu1 %v2382_v17  ;;  %v2422_v44 = vld [vmem:[#allocation5 + $0x164] ss:$16 sps:$4 sm:$0xff]   ;;  %v2424_v45 = vld [vmem:[#allocation5 + $0x16c] ss:$16 sps:$4 sm:$0xff]   ;;  %v2426_v46 = vld [vmem:[#allocation5 + $0x160] ss:$16 sps:$4 sm:$0xff]  }
  0x48   :  { %v2427_v47 = vld [vmem:[#allocation5 + $0x168] ss:$16 sps:$4 sm:$0xff]   ;;  %v2428_v49 = vld [vmem:[#allocation5 + $0x184] ss:$16 sps:$4 sm:$0xff]   ;;  %v2430_v50 = vld [vmem:[#allocation5 + $0x18c] ss:$16 sps:$4 sm:$0xff]  }
  0x49   :  { %v2454_v48 = vld [vmem:[#allocation2 + $0x4] ss:$28 sps:$4 sm:$0xff]   ;;  %v2432_v51 = vld [vmem:[#allocation5 + $0x180] ss:$16 sps:$4 sm:$0xff]   ;;  %v2434_v53 = vld [vmem:[#allocation5 + $0x1a4] ss:$16 sps:$4 sm:$0xff]  }
  0x4a   :  { %1317 = vmatpush1.bf16.msra.mxu0 %v2384_v18  ;;  %1489 = vmatpush1.bf16.msra.mxu1 %v2385_v19  ;;  %v2433_v52 = vld [vmem:[#allocation5 + $0x188] ss:$16 sps:$4 sm:$0xff]   ;;  %v2436_v54 = vld [vmem:[#allocation5 + $0x1ac] ss:$16 sps:$4 sm:$0xff]   ;;  %v2438_v55 = vld [vmem:[#allocation5 + $0x1a0] ss:$16 sps:$4 sm:$0xff]  }
  0x4b   :  { %1318 = vmatprep.subr.bf16.mxu0 %v2386_v20  ;;  %1490 = vmatprep.subr.bf16.mxu1 %v2388_v21  ;;  %v2439_v56 = vld [vmem:[#allocation5 + $0x1a8] ss:$16 sps:$4 sm:$0xff]   ;;  %v2440_v57 = vld [vmem:[#allocation5 + $0x1c4] ss:$16 sps:$4 sm:$0xff]   ;;  %v2442_v58 = vld [vmem:[#allocation5 + $0x1cc] ss:$16 sps:$4 sm:$0xff]  }
  0x4c   :  { %1340 = vmatprep.mubr.bf16.mxu0 %v2454_v48  ;;  %1512 = vmatprep.mubr.bf16.mxu1 %v2454_v48  ;;  %v2444_v59 = vld [vmem:[#allocation5 + $0x1c0] ss:$16 sps:$4 sm:$0xff]   ;;  %v2445_v60 = vld [vmem:[#allocation5 + $0x1c8] ss:$16 sps:$4 sm:$0xff]   ;;  %v2446_v61 = vld [vmem:[#allocation5 + $0x1e4] ss:$16 sps:$4 sm:$0xff]  }
  0x4d   :  { %v2448_v62 = vld [vmem:[#allocation5 + $0x1ec] ss:$16 sps:$4 sm:$0xff]   ;;  %v2450_v63 = vld [vmem:[#allocation5 + $0x1e0] ss:$16 sps:$4 sm:$0xff]   ;;  %v2451_v0 = vld [vmem:[#allocation5 + $0x1e8] ss:$16 sps:$4 sm:$0xff]  }
  0x4e   :  { %1319 = vmatpush1.bf16.msra.mxu0 %v2390_v22  ;;  %1491 = vmatpush1.bf16.msra.mxu1 %v2391_v23  ;;  %v2457_v1 = vld [vmem:[#allocation5 + $0x204] ss:$16 sps:$4 sm:$0xff]   ;;  %v2460_v2 = vld [vmem:[#allocation5 + $0x20c] ss:$16 sps:$4 sm:$0xff]   ;;  %v2455_v4 = vld [vmem:[#allocation5 + $0x200] ss:$16 sps:$4 sm:$0xff]  }
  0x4f   :  { %1320 = vmatprep.subr.bf16.mxu0 %v2392_v24  ;;  %1492 = vmatprep.subr.bf16.mxu1 %v2394_v25  ;;  %v2452_v3 = vld [vmem:[#allocation2] ss:$28 sps:$4 sm:$0xff]   ;;  %v2466_v7 = vld [vmem:[#allocation5 + $0x22c] ss:$16 sps:$4 sm:$0xff]   ;;  %v2461_v8 = vld [vmem:[#allocation5 + $0x220] ss:$16 sps:$4 sm:$0xff]  }
  0x50   :  { %v2458_v5 = vld [vmem:[#allocation5 + $0x208] ss:$16 sps:$4 sm:$0xff]   ;;  %v2463_v6 = vld [vmem:[#allocation5 + $0x224] ss:$16 sps:$4 sm:$0xff]   ;;  %v2472_v11 = vld [vmem:[#allocation5 + $0x24c] ss:$16 sps:$4 sm:$0xff]  }
  0x51   :  { %v2464_v9 = vld [vmem:[#allocation5 + $0x228] ss:$16 sps:$4 sm:$0xff]   ;;  %v2469_v10 = vld [vmem:[#allocation5 + $0x244] ss:$16 sps:$4 sm:$0xff]   ;;  %v2467_v12 = vld [vmem:[#allocation5 + $0x240] ss:$16 sps:$4 sm:$0xff]  }
  0x52   :  { %1321 = vmatpush1.bf16.msra.mxu0 %v2396_v26  ;;  %1493 = vmatpush1.bf16.msra.mxu1 %v2397_v27  ;;  %v2470_v13 = vld [vmem:[#allocation5 + $0x248] ss:$16 sps:$4 sm:$0xff]   ;;  %v2475_v14 = vld [vmem:[#allocation5 + $0x264] ss:$16 sps:$4 sm:$0xff]   ;;  %v2478_v15 = vld [vmem:[#allocation5 + $0x26c] ss:$16 sps:$4 sm:$0xff]  }
  0x53   :  { %1322 = vmatprep.subr.bf16.mxu0 %v2398_v28  ;;  %1494 = vmatprep.subr.bf16.mxu1 %v2400_v29  ;;  %v2473_v16 = vld [vmem:[#allocation5 + $0x260] ss:$16 sps:$4 sm:$0xff]   ;;  %v2476_v17 = vld [vmem:[#allocation5 + $0x268] ss:$16 sps:$4 sm:$0xff]   ;;  %v2481_v18 = vld [vmem:[#allocation5 + $0x284] ss:$16 sps:$4 sm:$0xff]  }
  0x54   :  { %v2484_v19 = vld [vmem:[#allocation5 + $0x28c] ss:$16 sps:$4 sm:$0xff]   ;;  %v2479_v20 = vld [vmem:[#allocation5 + $0x280] ss:$16 sps:$4 sm:$0xff]   ;;  %v2482_v21 = vld [vmem:[#allocation5 + $0x288] ss:$16 sps:$4 sm:$0xff]  }
  0x55   :  { %v2487_v22 = vld [vmem:[#allocation5 + $0x2a4] ss:$16 sps:$4 sm:$0xff]   ;;  %v2490_v23 = vld [vmem:[#allocation5 + $0x2ac] ss:$16 sps:$4 sm:$0xff]   ;;  %v2485_v24 = vld [vmem:[#allocation5 + $0x2a0] ss:$16 sps:$4 sm:$0xff]  }
  0x56   :  { %1323 = vmatpush1.bf16.msra.mxu0 %v2402_v30  ;;  %1495 = vmatpush1.bf16.msra.mxu1 %v2403_v31  ;;  %v2488_v25 = vld [vmem:[#allocation5 + $0x2a8] ss:$16 sps:$4 sm:$0xff]   ;;  %v2493_v26 = vld [vmem:[#allocation5 + $0x2c4] ss:$16 sps:$4 sm:$0xff]   ;;  %v2496_v27 = vld [vmem:[#allocation5 + $0x2cc] ss:$16 sps:$4 sm:$0xff]  }
  0x57   :  { %1324 = vmatprep.subr.bf16.mxu0 %v2404_v32  ;;  %1496 = vmatprep.subr.bf16.mxu1 %v2406_v33  ;;  %v2491_v28 = vld [vmem:[#allocation5 + $0x2c0] ss:$16 sps:$4 sm:$0xff]   ;;  %v2494_v29 = vld [vmem:[#allocation5 + $0x2c8] ss:$16 sps:$4 sm:$0xff]   ;;  %v2499_v31 = vld [vmem:[#allocation5 + $0x2e4] ss:$16 sps:$4 sm:$0xff]  }
  0x58   :  { %v2553_v30 = vld [vmem:[#allocation2 + $0xc] ss:$28 sps:$4 sm:$0xff]   ;;  %v2502_v32 = vld [vmem:[#allocation5 + $0x2ec] ss:$16 sps:$4 sm:$0xff]   ;;  %vm1304_vm0 = vcmask 130048   ;;  %s2796_s10 = smov [#allocation8]  }
  0x59   :  { %v2497_v33 = vld [vmem:[#allocation5 + $0x2e0] ss:$16 sps:$4 sm:$0xff]   ;;  %v2526_v48 = vld [vmem:[#allocation5 + $0x36c] ss:$16 sps:$4 sm:$0xff]   ;;  %s2016_s11 = sshll.u32 %s2796_s10, 4  ;;  %s2017_s11 = int_to_ptr.vmem [resolvable:$true] %s2016_s11 }
  0x5a   :  { %1325 = vmatpush1.bf16.msra.mxu0 %v2408_v34  ;;  %1497 = vmatpush1.bf16.msra.mxu1 %v2409_v35  ;;  %v2500_v34 = vld [vmem:[#allocation5 + $0x2e8] ss:$16 sps:$4 sm:$0xff]   ;;  %v2505_v35 = vld [vmem:[#allocation5 + $0x304] ss:$16 sps:$4 sm:$0xff]   ;;  %p2763_p11 = scmp.lt.s32.totalorder %s2017_s11, %s2017_s11 }
  0x5b   :  { %1326 = vmatprep.subr.bf16.mxu0 %v2410_v36  ;;  %1498 = vmatprep.subr.bf16.mxu1 %v2412_v37  ;;  %v2508_v36 = vld [vmem:[#allocation5 + $0x30c] ss:$16 sps:$4 sm:$0xff]   ;;  %v2503_v37 = vld [vmem:[#allocation5 + $0x300] ss:$16 sps:$4 sm:$0xff]  }
  0x5e   :  { %1327 = vmatpush1.bf16.msra.mxu0 %v2414_v38  ;;  %1499 = vmatpush1.bf16.msra.mxu1 %v2415_v39  ;;  %v2506_v38 = vld [vmem:[#allocation5 + $0x308] ss:$16 sps:$4 sm:$0xff]   ;;  %v2511_v39 = vld [vmem:[#allocation5 + $0x324] ss:$16 sps:$4 sm:$0xff]  }
  0x5f   :  { %1328 = vmatprep.subr.bf16.mxu0 %v2416_v40  ;;  %1500 = vmatprep.subr.bf16.mxu1 %v2418_v41  ;;  %v2514_v40 = vld [vmem:[#allocation5 + $0x32c] ss:$16 sps:$4 sm:$0xff]   ;;  %v2509_v41 = vld [vmem:[#allocation5 + $0x320] ss:$16 sps:$4 sm:$0xff]  }
  0x62   :  { %1329 = vmatpush1.bf16.msra.mxu0 %v2420_v42  ;;  %1501 = vmatpush1.bf16.msra.mxu1 %v2421_v43  ;;  %v2512_v42 = vld [vmem:[#allocation5 + $0x328] ss:$16 sps:$4 sm:$0xff]   ;;  %v2517_v43 = vld [vmem:[#allocation5 + $0x344] ss:$16 sps:$4 sm:$0xff]  }
  0x63   :  { %1330 = vmatprep.subr.bf16.mxu0 %v2422_v44  ;;  %1502 = vmatprep.subr.bf16.mxu1 %v2424_v45  ;;  %v2520_v44 = vld [vmem:[#allocation5 + $0x34c] ss:$16 sps:$4 sm:$0xff]   ;;  %v2515_v45 = vld [vmem:[#allocation5 + $0x340] ss:$16 sps:$4 sm:$0xff]  }
  0x66   :  { %1331 = vmatpush1.bf16.msra.mxu0 %v2426_v46  ;;  %1503 = vmatpush1.bf16.msra.mxu1 %v2427_v47  ;;  %v2518_v46 = vld [vmem:[#allocation5 + $0x348] ss:$16 sps:$4 sm:$0xff]   ;;  %v2523_v47 = vld [vmem:[#allocation5 + $0x364] ss:$16 sps:$4 sm:$0xff]  }
  0x67   :  { %1332 = vmatprep.subr.bf16.mxu0 %v2428_v49  ;;  %1504 = vmatprep.subr.bf16.mxu1 %v2430_v50  ;;  %v2521_v49 = vld [vmem:[#allocation5 + $0x360] ss:$16 sps:$4 sm:$0xff]   ;;  %v2524_v50 = vld [vmem:[#allocation5 + $0x368] ss:$16 sps:$4 sm:$0xff]  }
  0x6a   :  { %1333 = vmatpush1.bf16.msra.mxu0 %v2432_v51  ;;  %1505 = vmatpush1.bf16.msra.mxu1 %v2433_v52  ;;  %v2529_v51 = vld [vmem:[#allocation5 + $0x384] ss:$16 sps:$4 sm:$0xff]   ;;  %v2532_v52 = vld [vmem:[#allocation5 + $0x38c] ss:$16 sps:$4 sm:$0xff]  }
  0x6b   :  { %1334 = vmatprep.subr.bf16.mxu0 %v2434_v53  ;;  %1506 = vmatprep.subr.bf16.mxu1 %v2436_v54  ;;  %v2527_v53 = vld [vmem:[#allocation5 + $0x380] ss:$16 sps:$4 sm:$0xff]   ;;  %v2530_v54 = vld [vmem:[#allocation5 + $0x388] ss:$16 sps:$4 sm:$0xff]  }
  0x6e   :  { %1335 = vmatpush1.bf16.msra.mxu0 %v2438_v55  ;;  %1507 = vmatpush1.bf16.msra.mxu1 %v2439_v56  ;;  %v2535_v55 = vld [vmem:[#allocation5 + $0x3a4] ss:$16 sps:$4 sm:$0xff]   ;;  %v2538_v56 = vld [vmem:[#allocation5 + $0x3ac] ss:$16 sps:$4 sm:$0xff]  }
  0x6f   :  { %1336 = vmatprep.subr.bf16.mxu0 %v2440_v57  ;;  %1508 = vmatprep.subr.bf16.mxu1 %v2442_v58  ;;  %v2533_v57 = vld [vmem:[#allocation5 + $0x3a0] ss:$16 sps:$4 sm:$0xff]   ;;  %v2536_v58 = vld [vmem:[#allocation5 + $0x3a8] ss:$16 sps:$4 sm:$0xff]  }
  0x72   :  { %1337 = vmatpush1.bf16.msra.mxu0 %v2444_v59  ;;  %1509 = vmatpush1.bf16.msra.mxu1 %v2445_v60  ;;  %v2541_v59 = vld [vmem:[#allocation5 + $0x3c4] ss:$16 sps:$4 sm:$0xff]   ;;  %v2544_v60 = vld [vmem:[#allocation5 + $0x3cc] ss:$16 sps:$4 sm:$0xff]  }
  0x73   :  { %1338 = vmatprep.subr.bf16.mxu0 %v2446_v61  ;;  %1510 = vmatprep.subr.bf16.mxu1 %v2448_v62  ;;  %v2539_v61 = vld [vmem:[#allocation5 + $0x3c0] ss:$16 sps:$4 sm:$0xff]   ;;  %v2542_v62 = vld [vmem:[#allocation5 + $0x3c8] ss:$16 sps:$4 sm:$0xff]  }
  0x76   :  { %1339 = vmatpush1.bf16.msra.mxu0 %v2450_v63  ;;  %1511 = vmatpush1.bf16.msra.mxu1 %v2451_v0  ;;  %v2547_v63 = vld [vmem:[#allocation5 + $0x3e4] ss:$16 sps:$4 sm:$0xff]   ;;  %v2550_v0 = vld [vmem:[#allocation5 + $0x3ec] ss:$16 sps:$4 sm:$0xff]  }
  0x77   :  { %1351 = vmatprep.subr.bf16.mxu0 %v2457_v1  ;;  %1523 = vmatprep.subr.bf16.mxu1 %v2460_v2  ;;  %v2545_v1 = vld [vmem:[#allocation5 + $0x3e0] ss:$16 sps:$4 sm:$0xff]   ;;  %v2548_v2 = vld [vmem:[#allocation5 + $0x3e8] ss:$16 sps:$4 sm:$0xff]  }
  0x79   :  { %1341 = vmatmul.mubr.bf16.vlgmr.msra.gmra.mrb[0].mxu0 %v2452_v3  ;;  %1513 = vmatmul.mubr.bf16.vlgmr.msra.gmra.mrb[0].mxu1 %v2452_v3  ;;  %v2556_v3 = vld [vmem:[#allocation5 + $0x404] ss:$16 sps:$4 sm:$0xff]  }
  0x7a   :  { %1352 = vmatpush1.bf16.msra.mxu0 %v2455_v4  ;;  %1524 = vmatpush1.bf16.msra.mxu1 %v2458_v5  ;;  %v2559_v4 = vld [vmem:[#allocation5 + $0x40c] ss:$16 sps:$4 sm:$0xff]  }
  0x7b   :  { %1353 = vmatprep.subr.bf16.mxu0 %v2463_v6  ;;  %1525 = vmatprep.subr.bf16.mxu1 %v2466_v7  ;;  %v2551_v5 = vld [vmem:[#allocation2 + $0x8] ss:$28 sps:$4 sm:$0xff]   ;;  %v2557_v7 = vld [vmem:[#allocation5 + $0x408] ss:$16 sps:$4 sm:$0xff]  }
  0x7c   :  { %1383 = vmatprep.mubr.bf16.mxu0 %v2553_v30  ;;  %1555 = vmatprep.mubr.bf16.mxu1 %v2553_v30  ;;  %v2554_v6 = vld [vmem:[#allocation5 + $0x400] ss:$16 sps:$4 sm:$0xff]   ;;  %v2595_v30 = vld [vmem:[#allocation5 + $0x4cc] ss:$16 sps:$4 sm:$0xff]  }
  0x7e   :  { %1354 = vmatpush1.bf16.msra.mxu0 %v2461_v8  ;;  %1526 = vmatpush1.bf16.msra.mxu1 %v2464_v9  ;;  %v2562_v8 = vld [vmem:[#allocation5 + $0x424] ss:$16 sps:$4 sm:$0xff]   ;;  %v2565_v9 = vld [vmem:[#allocation5 + $0x42c] ss:$16 sps:$4 sm:$0xff]  }
  0x7f   :  { %1355 = vmatprep.subr.bf16.mxu0 %v2469_v10  ;;  %1527 = vmatprep.subr.bf16.mxu1 %v2472_v11  ;;  %v2560_v10 = vld [vmem:[#allocation5 + $0x420] ss:$16 sps:$4 sm:$0xff]   ;;  %v2563_v11 = vld [vmem:[#allocation5 + $0x428] ss:$16 sps:$4 sm:$0xff]  }
  0x82   :  { %1356 = vmatpush1.bf16.msra.mxu0 %v2467_v12  ;;  %1528 = vmatpush1.bf16.msra.mxu1 %v2470_v13  ;;  %v2652_v12 = vld [vmem:[#allocation2 + $0x14] ss:$28 sps:$4 sm:$0xff]   ;;  %v2568_v13 = vld [vmem:[#allocation5 + $0x444] ss:$16 sps:$4 sm:$0xff]  }
  0x83   :  { %1357 = vmatprep.subr.bf16.mxu0 %v2475_v14  ;;  %1529 = vmatprep.subr.bf16.mxu1 %v2478_v15  ;;  %v2571_v14 = vld [vmem:[#allocation5 + $0x44c] ss:$16 sps:$4 sm:$0xff]   ;;  %v2566_v15 = vld [vmem:[#allocation5 + $0x440] ss:$16 sps:$4 sm:$0xff]  }
  0x86   :  { %1358 = vmatpush1.bf16.msra.mxu0 %v2473_v16  ;;  %1530 = vmatpush1.bf16.msra.mxu1 %v2476_v17  ;;  %v2569_v16 = vld [vmem:[#allocation5 + $0x448] ss:$16 sps:$4 sm:$0xff]   ;;  %v2574_v17 = vld [vmem:[#allocation5 + $0x464] ss:$16 sps:$4 sm:$0xff]  }
  0x87   :  { %1359 = vmatprep.subr.bf16.mxu0 %v2481_v18  ;;  %1531 = vmatprep.subr.bf16.mxu1 %v2484_v19  ;;  %v2577_v18 = vld [vmem:[#allocation5 + $0x46c] ss:$16 sps:$4 sm:$0xff]   ;;  %v2572_v19 = vld [vmem:[#allocation5 + $0x460] ss:$16 sps:$4 sm:$0xff]  }
  0x8a   :  { %1360 = vmatpush1.bf16.msra.mxu0 %v2479_v20  ;;  %1532 = vmatpush1.bf16.msra.mxu1 %v2482_v21  ;;  %v2575_v20 = vld [vmem:[#allocation5 + $0x468] ss:$16 sps:$4 sm:$0xff]   ;;  %v2580_v21 = vld [vmem:[#allocation5 + $0x484] ss:$16 sps:$4 sm:$0xff]  }
  0x8b   :  { %1361 = vmatprep.subr.bf16.mxu0 %v2487_v22  ;;  %1533 = vmatprep.subr.bf16.mxu1 %v2490_v23  ;;  %v2583_v22 = vld [vmem:[#allocation5 + $0x48c] ss:$16 sps:$4 sm:$0xff]   ;;  %v2578_v23 = vld [vmem:[#allocation5 + $0x480] ss:$16 sps:$4 sm:$0xff]  }
  0x8e   :  { %1362 = vmatpush1.bf16.msra.mxu0 %v2485_v24  ;;  %1534 = vmatpush1.bf16.msra.mxu1 %v2488_v25  ;;  %v2581_v24 = vld [vmem:[#allocation5 + $0x488] ss:$16 sps:$4 sm:$0xff]   ;;  %v2586_v25 = vld [vmem:[#allocation5 + $0x4a4] ss:$16 sps:$4 sm:$0xff]  }
  0x8f   :  { %1363 = vmatprep.subr.bf16.mxu0 %v2493_v26  ;;  %1535 = vmatprep.subr.bf16.mxu1 %v2496_v27  ;;  %v2589_v26 = vld [vmem:[#allocation5 + $0x4ac] ss:$16 sps:$4 sm:$0xff]   ;;  %v2584_v27 = vld [vmem:[#allocation5 + $0x4a0] ss:$16 sps:$4 sm:$0xff]  }
  0x92   :  { %1364 = vmatpush1.bf16.msra.mxu0 %v2491_v28  ;;  %1536 = vmatpush1.bf16.msra.mxu1 %v2494_v29  ;;  %v2587_v28 = vld [vmem:[#allocation5 + $0x4a8] ss:$16 sps:$4 sm:$0xff]   ;;  %v2592_v29 = vld [vmem:[#allocation5 + $0x4c4] ss:$16 sps:$4 sm:$0xff]  }
  0x93   :  { %1365 = vmatprep.subr.bf16.mxu0 %v2499_v31  ;;  %1537 = vmatprep.subr.bf16.mxu1 %v2502_v32  ;;  %v2590_v31 = vld [vmem:[#allocation5 + $0x4c0] ss:$16 sps:$4 sm:$0xff]   ;;  %v2593_v32 = vld [vmem:[#allocation5 + $0x4c8] ss:$16 sps:$4 sm:$0xff]  }
  0x96   :  { %1366 = vmatpush1.bf16.msra.mxu0 %v2497_v33  ;;  %1538 = vmatpush1.bf16.msra.mxu1 %v2500_v34  ;;  %v2598_v33 = vld [vmem:[#allocation5 + $0x4e4] ss:$16 sps:$4 sm:$0xff]   ;;  %v2601_v34 = vld [vmem:[#allocation5 + $0x4ec] ss:$16 sps:$4 sm:$0xff]  }
  0x97   :  { %1367 = vmatprep.subr.bf16.mxu0 %v2505_v35  ;;  %1539 = vmatprep.subr.bf16.mxu1 %v2508_v36  ;;  %v2596_v35 = vld [vmem:[#allocation5 + $0x4e0] ss:$16 sps:$4 sm:$0xff]   ;;  %v2599_v36 = vld [vmem:[#allocation5 + $0x4e8] ss:$16 sps:$4 sm:$0xff]  }
  0x9a   :  { %1368 = vmatpush1.bf16.msra.mxu0 %v2503_v37  ;;  %1540 = vmatpush1.bf16.msra.mxu1 %v2506_v38  ;;  %v2604_v37 = vld [vmem:[#allocation5 + $0x504] ss:$16 sps:$4 sm:$0xff]   ;;  %v2607_v38 = vld [vmem:[#allocation5 + $0x50c] ss:$16 sps:$4 sm:$0xff]  }
  0x9b   :  { %1369 = vmatprep.subr.bf16.mxu0 %v2511_v39  ;;  %1541 = vmatprep.subr.bf16.mxu1 %v2514_v40  ;;  %v2602_v39 = vld [vmem:[#allocation5 + $0x500] ss:$16 sps:$4 sm:$0xff]   ;;  %v2605_v40 = vld [vmem:[#allocation5 + $0x508] ss:$16 sps:$4 sm:$0xff]  }
  0x9e   :  { %1370 = vmatpush1.bf16.msra.mxu0 %v2509_v41  ;;  %1542 = vmatpush1.bf16.msra.mxu1 %v2512_v42  ;;  %v2610_v41 = vld [vmem:[#allocation5 + $0x524] ss:$16 sps:$4 sm:$0xff]   ;;  %v2613_v42 = vld [vmem:[#allocation5 + $0x52c] ss:$16 sps:$4 sm:$0xff]  }
  0x9f   :  { %1371 = vmatprep.subr.bf16.mxu0 %v2517_v43  ;;  %1543 = vmatprep.subr.bf16.mxu1 %v2520_v44  ;;  %v2608_v43 = vld [vmem:[#allocation5 + $0x520] ss:$16 sps:$4 sm:$0xff]   ;;  %v2611_v44 = vld [vmem:[#allocation5 + $0x528] ss:$16 sps:$4 sm:$0xff]  }
  0xa2   :  { %1372 = vmatpush1.bf16.msra.mxu0 %v2515_v45  ;;  %1544 = vmatpush1.bf16.msra.mxu1 %v2518_v46  ;;  %v2616_v45 = vld [vmem:[#allocation5 + $0x544] ss:$16 sps:$4 sm:$0xff]   ;;  %v2619_v46 = vld [vmem:[#allocation5 + $0x54c] ss:$16 sps:$4 sm:$0xff]  }
  0xa3   :  { %1373 = vmatprep.subr.bf16.mxu0 %v2523_v47  ;;  %1545 = vmatprep.subr.bf16.mxu1 %v2526_v48  ;;  %v2614_v47 = vld [vmem:[#allocation5 + $0x540] ss:$16 sps:$4 sm:$0xff]   ;;  %v2617_v48 = vld [vmem:[#allocation5 + $0x548] ss:$16 sps:$4 sm:$0xff]  }
  0xa6   :  { %1374 = vmatpush1.bf16.msra.mxu0 %v2521_v49  ;;  %1546 = vmatpush1.bf16.msra.mxu1 %v2524_v50  ;;  %v2622_v49 = vld [vmem:[#allocation5 + $0x564] ss:$16 sps:$4 sm:$0xff]   ;;  %v2625_v50 = vld [vmem:[#allocation5 + $0x56c] ss:$16 sps:$4 sm:$0xff]  }
  0xa7   :  { %1375 = vmatprep.subr.bf16.mxu0 %v2529_v51  ;;  %1547 = vmatprep.subr.bf16.mxu1 %v2532_v52  ;;  %v2620_v51 = vld [vmem:[#allocation5 + $0x560] ss:$16 sps:$4 sm:$0xff]   ;;  %v2623_v52 = vld [vmem:[#allocation5 + $0x568] ss:$16 sps:$4 sm:$0xff]  }
  0xaa   :  { %1376 = vmatpush1.bf16.msra.mxu0 %v2527_v53  ;;  %1548 = vmatpush1.bf16.msra.mxu1 %v2530_v54  ;;  %v2628_v53 = vld [vmem:[#allocation5 + $0x584] ss:$16 sps:$4 sm:$0xff]   ;;  %v2631_v54 = vld [vmem:[#allocation5 + $0x58c] ss:$16 sps:$4 sm:$0xff]  }
  0xab   :  { %1377 = vmatprep.subr.bf16.mxu0 %v2535_v55  ;;  %1549 = vmatprep.subr.bf16.mxu1 %v2538_v56  ;;  %v2626_v55 = vld [vmem:[#allocation5 + $0x580] ss:$16 sps:$4 sm:$0xff]   ;;  %v2629_v56 = vld [vmem:[#allocation5 + $0x588] ss:$16 sps:$4 sm:$0xff]  }
  0xae   :  { %1378 = vmatpush1.bf16.msra.mxu0 %v2533_v57  ;;  %1550 = vmatpush1.bf16.msra.mxu1 %v2536_v58  ;;  %v2634_v57 = vld [vmem:[#allocation5 + $0x5a4] ss:$16 sps:$4 sm:$0xff]   ;;  %v2637_v58 = vld [vmem:[#allocation5 + $0x5ac] ss:$16 sps:$4 sm:$0xff]  }
  0xaf   :  { %1379 = vmatprep.subr.bf16.mxu0 %v2541_v59  ;;  %1551 = vmatprep.subr.bf16.mxu1 %v2544_v60  ;;  %v2632_v59 = vld [vmem:[#allocation5 + $0x5a0] ss:$16 sps:$4 sm:$0xff]   ;;  %v2635_v60 = vld [vmem:[#allocation5 + $0x5a8] ss:$16 sps:$4 sm:$0xff]  }
  0xb2   :  { %1380 = vmatpush1.bf16.msra.mxu0 %v2539_v61  ;;  %1552 = vmatpush1.bf16.msra.mxu1 %v2542_v62  ;;  %v2640_v61 = vld [vmem:[#allocation5 + $0x5c4] ss:$16 sps:$4 sm:$0xff]   ;;  %v2643_v62 = vld [vmem:[#allocation5 + $0x5cc] ss:$16 sps:$4 sm:$0xff]  }
  0xb3   :  { %1381 = vmatprep.subr.bf16.mxu0 %v2547_v63  ;;  %1553 = vmatprep.subr.bf16.mxu1 %v2550_v0  ;;  %v2638_v63 = vld [vmem:[#allocation5 + $0x5c0] ss:$16 sps:$4 sm:$0xff]   ;;  %v2641_v0 = vld [vmem:[#allocation5 + $0x5c8] ss:$16 sps:$4 sm:$0xff]  }
  0xb6   :  { %1382 = vmatpush1.bf16.msra.mxu0 %v2545_v1  ;;  %1554 = vmatpush1.bf16.msra.mxu1 %v2548_v2  ;;  %v2646_v1 = vld [vmem:[#allocation5 + $0x5e4] ss:$16 sps:$4 sm:$0xff]   ;;  %v2649_v2 = vld [vmem:[#allocation5 + $0x5ec] ss:$16 sps:$4 sm:$0xff]  }
  0xb7   :  { %1394 = vmatprep.subr.bf16.mxu0 %v2556_v3  ;;  %1566 = vmatprep.subr.bf16.mxu1 %v2559_v4  ;;  %v2644_v3 = vld [vmem:[#allocation5 + $0x5e0] ss:$16 sps:$4 sm:$0xff]   ;;  %v2647_v4 = vld [vmem:[#allocation5 + $0x5e8] ss:$16 sps:$4 sm:$0xff]  }
  0xb9   :  { %1384 = vmatmul.mubr.bf16.vlgmr.msra.gmra.mrb[0].mxu0 %v2551_v5  ;;  %1556 = vmatmul.mubr.bf16.vlgmr.msra.gmra.mrb[0].mxu1 %v2551_v5  ;;  %v2655_v5 = vld [vmem:[#allocation5 + $0x604] ss:$16 sps:$4 sm:$0xff]  }
  0xba   :  { %1395 = vmatpush1.bf16.msra.mxu0 %v2554_v6  ;;  %1567 = vmatpush1.bf16.msra.mxu1 %v2557_v7  ;;  %v2658_v6 = vld [vmem:[#allocation5 + $0x60c] ss:$16 sps:$4 sm:$0xff]   ;;  %v2650_v7 = vld [vmem:[#allocation2 + $0x10] ss:$28 sps:$4 sm:$0xff]  }
  0xbb   :  { %1396 = vmatprep.subr.bf16.mxu0 %v2562_v8  ;;  %1568 = vmatprep.subr.bf16.mxu1 %v2565_v9  ;;  %v2653_v8 = vld [vmem:[#allocation5 + $0x600] ss:$16 sps:$4 sm:$0xff]   ;;  %v2656_v9 = vld [vmem:[#allocation5 + $0x608] ss:$16 sps:$4 sm:$0xff]  }
  0xbc   :  { %1426 = vmatprep.mubr.bf16.mxu0 %v2652_v12  ;;  %1598 = vmatprep.mubr.bf16.mxu1 %v2652_v12  ;;  %v2795_v12 = vmov 0  }
  0xbe   :  { %1397 = vmatpush1.bf16.msra.mxu0 %v2560_v10  ;;  %1569 = vmatpush1.bf16.msra.mxu1 %v2563_v11  ;;  %v2660_v10 = vld [vmem:[#allocation7 + $0x40] sm:$0xff]  }
  0xbf   :  { %1398 = vmatprep.subr.bf16.mxu0 %v2568_v13  ;;  %1570 = vmatprep.subr.bf16.mxu1 %v2571_v14  ;;  %v2661_v11 = vld [vmem:[#allocation7 + $0xc0] sm:$0xff]  }
  0xc0   :  { %v2659_v13 = vld [vmem:[#allocation2 + $0x18] ss:$28 sps:$4 sm:$0xff]  }
  0xc1   :  { %v2662_v14 = vld [vmem:[#allocation7] sm:$0xff]  }
  0xc2   :  { %1399 = vmatpush1.bf16.msra.mxu0 %v2566_v15  ;;  %1571 = vmatpush1.bf16.msra.mxu1 %v2569_v16  ;;  %v2663_v15 = vld [vmem:[#allocation7 + $0x80] sm:$0xff]   ;;  %v2664_v16 = vld [vmem:[#allocation7 + $0x48] sm:$0xff]  }
  0xc3   :  { %1400 = vmatprep.subr.bf16.mxu0 %v2574_v17  ;;  %1572 = vmatprep.subr.bf16.mxu1 %v2577_v18  ;;  %v2665_v17 = vld [vmem:[#allocation7 + $0xc8] sm:$0xff]  }
  0xc4   :  { %v2666_v18 = vld [vmem:[#allocation7 + $0x8] sm:$0xff]  }
  0xc6   :  { %1401 = vmatpush1.bf16.msra.mxu0 %v2572_v19  ;;  %1573 = vmatpush1.bf16.msra.mxu1 %v2575_v20  ;;  %v2667_v19 = vld [vmem:[#allocation7 + $0x88] sm:$0xff]   ;;  %v2668_v20 = vld [vmem:[#allocation7 + $0x50] sm:$0xff]  }
  0xc7   :  { %1402 = vmatprep.subr.bf16.mxu0 %v2580_v21  ;;  %1574 = vmatprep.subr.bf16.mxu1 %v2583_v22  ;;  %v2669_v21 = vld [vmem:[#allocation7 + $0xd0] sm:$0xff]  }
  0xc8   :  { %v2670_v22 = vld [vmem:[#allocation7 + $0x10] sm:$0xff]  }
  0xca   :  { %1403 = vmatpush1.bf16.msra.mxu0 %v2578_v23  ;;  %1575 = vmatpush1.bf16.msra.mxu1 %v2581_v24  ;;  %v2671_v23 = vld [vmem:[#allocation7 + $0x90] sm:$0xff]   ;;  %v2672_v24 = vld [vmem:[#allocation7 + $0x58] sm:$0xff]  }
  0xcb   :  { %1404 = vmatprep.subr.bf16.mxu0 %v2586_v25  ;;  %1576 = vmatprep.subr.bf16.mxu1 %v2589_v26  ;;  %v2673_v25 = vld [vmem:[#allocation7 + $0xd8] sm:$0xff]  }
  0xcc   :  { %v2674_v26 = vld [vmem:[#allocation7 + $0x18] sm:$0xff]  }
  0xce   :  { %1405 = vmatpush1.bf16.msra.mxu0 %v2584_v27  ;;  %1577 = vmatpush1.bf16.msra.mxu1 %v2587_v28  ;;  %v2675_v27 = vld [vmem:[#allocation7 + $0x98] sm:$0xff]   ;;  %v2676_v28 = vld [vmem:[#allocation7 + $0x60] sm:$0xff]  }
  0xcf   :  { %1406 = vmatprep.subr.bf16.mxu0 %v2592_v29  ;;  %1578 = vmatprep.subr.bf16.mxu1 %v2595_v30  ;;  %v2677_v29 = vld [vmem:[#allocation7 + $0xe0] sm:$0xff]  }
  0xd0   :  { %v2678_v30 = vld [vmem:[#allocation7 + $0x20] sm:$0xff]  }
  0xd2   :  { %1407 = vmatpush1.bf16.msra.mxu0 %v2590_v31  ;;  %1579 = vmatpush1.bf16.msra.mxu1 %v2593_v32  ;;  %v2679_v31 = vld [vmem:[#allocation7 + $0xa0] sm:$0xff]   ;;  %v2680_v32 = vld [vmem:[#allocation7 + $0x68] sm:$0xff]  }
  0xd3   :  { %1408 = vmatprep.subr.bf16.mxu0 %v2598_v33  ;;  %1580 = vmatprep.subr.bf16.mxu1 %v2601_v34  ;;  %v2681_v33 = vld [vmem:[#allocation7 + $0xe8] sm:$0xff]  }
  0xd4   :  { %v2682_v34 = vld [vmem:[#allocation7 + $0x28] sm:$0xff]  }
  0xd6   :  { %1409 = vmatpush1.bf16.msra.mxu0 %v2596_v35  ;;  %1581 = vmatpush1.bf16.msra.mxu1 %v2599_v36  ;;  %v2683_v35 = vld [vmem:[#allocation7 + $0xa8] sm:$0xff]   ;;  %v2684_v36 = vld [vmem:[#allocation7 + $0x70] sm:$0xff]  }
  0xd7   :  { %1410 = vmatprep.subr.bf16.mxu0 %v2604_v37  ;;  %1582 = vmatprep.subr.bf16.mxu1 %v2607_v38  ;;  %v2685_v37 = vld [vmem:[#allocation7 + $0xf0] sm:$0xff]  }
  0xd8   :  { %v2686_v38 = vld [vmem:[#allocation7 + $0x30] sm:$0xff]  }
  0xda   :  { %1411 = vmatpush1.bf16.msra.mxu0 %v2602_v39  ;;  %1583 = vmatpush1.bf16.msra.mxu1 %v2605_v40  ;;  %v2687_v39 = vld [vmem:[#allocation7 + $0xb0] sm:$0xff]   ;;  %v2688_v40 = vld [vmem:[#allocation7 + $0x78] sm:$0xff]  }
  0xdb   :  { %1412 = vmatprep.subr.bf16.mxu0 %v2610_v41  ;;  %1584 = vmatprep.subr.bf16.mxu1 %v2613_v42  ;;  %v2689_v41 = vld [vmem:[#allocation7 + $0xf8] sm:$0xff]  }
  0xdc   :  { %v2690_v42 = vld [vmem:[#allocation7 + $0x38] sm:$0xff]  }
  0xde   :  { %1413 = vmatpush1.bf16.msra.mxu0 %v2608_v43  ;;  %1585 = vmatpush1.bf16.msra.mxu1 %v2611_v44  ;;  %v2691_v43 = vld [vmem:[#allocation7 + $0xb8] sm:$0xff]   ;;  %v269_v44 = vlaneseq }
  0xdf   :  { %1414 = vmatprep.subr.bf16.mxu0 %v2616_v45  ;;  %1586 = vmatprep.subr.bf16.mxu1 %v2619_v46 }
  0xe0   :  { %v270_v45 = vshrl.u32 %v269_v44, 7 }
  0xe2   :  { %1415 = vmatpush1.bf16.msra.mxu0 %v2614_v47  ;;  %1587 = vmatpush1.bf16.msra.mxu1 %v2617_v48  ;;  %v271_v46 = vsub.s32 0, %v270_v45  ;;  %v279_v47 = vsub.s32 2, %v270_v45  ;;  %v267_v48 = vld [vmem:[%s2885_s2] sm:$0xf] }
  0xe3   :  { %1416 = vmatprep.subr.bf16.mxu0 %v2622_v49  ;;  %1588 = vmatprep.subr.bf16.mxu1 %v2625_v50  ;;  %v275_v49 = vsub.s32 1, %v270_v45  ;;  %v283_v50 = vsub.s32 3, %v270_v45 }
  0xe6   :  { %1417 = vmatpush1.bf16.msra.mxu0 %v2620_v51  ;;  %1589 = vmatpush1.bf16.msra.mxu1 %v2623_v52  ;;  %v272_v51 = vrot.slane %v267_v48, %v271_v46  ;;  %v280_v52 = vrot.slane %v267_v48, %v279_v47 }
  0xe7   :  { %1418 = vmatprep.subr.bf16.mxu0 %v2628_v53  ;;  %1590 = vmatprep.subr.bf16.mxu1 %v2631_v54  ;;  %v276_v53 = vrot.slane %v267_v48, %v275_v49  ;;  %v284_v54 = vrot.slane %v267_v48, %v283_v50 }
  0xea   :  { %1419 = vmatpush1.bf16.msra.mxu0 %v2626_v55  ;;  %1591 = vmatpush1.bf16.msra.mxu1 %v2629_v56 }
  0xeb   :  { %1420 = vmatprep.subr.bf16.mxu0 %v2634_v57  ;;  %1592 = vmatprep.subr.bf16.mxu1 %v2637_v58 }
  0xee   :  { %1421 = vmatpush1.bf16.msra.mxu0 %v2632_v59  ;;  %1593 = vmatpush1.bf16.msra.mxu1 %v2635_v60 }
  0xef   :  { %1422 = vmatprep.subr.bf16.mxu0 %v2640_v61  ;;  %1594 = vmatprep.subr.bf16.mxu1 %v2643_v62 }
  0xf2   :  { %1423 = vmatpush1.bf16.msra.mxu0 %v2638_v63  ;;  %1595 = vmatpush1.bf16.msra.mxu1 %v2641_v0 }
  0xf3   :  { %1424 = vmatprep.subr.bf16.mxu0 %v2646_v1  ;;  %1596 = vmatprep.subr.bf16.mxu1 %v2649_v2 }
  0xf6   :  { %1425 = vmatpush1.bf16.msra.mxu0 %v2644_v3  ;;  %1597 = vmatpush1.bf16.msra.mxu1 %v2647_v4 }
  0xf7   :  { %1437 = vmatprep.subr.bf16.mxu0 %v2655_v5  ;;  %1609 = vmatprep.subr.bf16.mxu1 %v2658_v6 }
  0xf9   :  { %1427 = vmatmul.mubr.bf16.vlgmr.msra.gmra.mrb[0].mxu0 %v2650_v7  ;;  %1599 = vmatmul.mubr.bf16.vlgmr.msra.gmra.mrb[0].mxu1 %v2650_v7 }
  0xfa   :  { %1438 = vmatpush1.bf16.msra.mxu0 %v2653_v8  ;;  %1610 = vmatpush1.bf16.msra.mxu1 %v2656_v9 }
  0xfb   :  { %1469 = vmatprep.mubr.bf16.mxu0 %v2795_v12  ;;  %1641 = vmatprep.mubr.bf16.mxu1 %v2795_v12 }
  0xfc   :  { %2267 = vmatprep.subr.bf16.mxu0 %v2660_v10  ;;  %2289 = vmatprep.subr.bf16.mxu1 %v2661_v11 }
 0x105   :  { %2232 = vmatmul.mubr.msk.bf16.vlgmr.msra.gmra.mrb[0].mxu0 %vm1304_vm0, %v2659_v13  ;;  %2233 = vmatmul.mubr.msk.bf16.vlgmr.msra.gmra.mrb[0].mxu1 %vm1304_vm0, %v2659_v13 }
 0x106   :  { %2268 = vmatpush3.bf16.msra.mxu0 %v2662_v14  ;;  %2290 = vmatpush3.bf16.msra.mxu1 %v2663_v15 }
 0x107   :  { %2269 = vmatprep.subr.bf16.mxu0 %v2664_v16  ;;  %2291 = vmatprep.subr.bf16.mxu1 %v2665_v17 }
 0x10a   :  { %2270 = vmatpush3.bf16.msra.mxu0 %v2666_v18  ;;  %2292 = vmatpush3.bf16.msra.mxu1 %v2667_v19 }
 0x10b   :  { %2271 = vmatprep.subr.bf16.mxu0 %v2668_v20  ;;  %2293 = vmatprep.subr.bf16.mxu1 %v2669_v21  ;;  %v2234_v21 = vld [vmem:[%s2887_s4] ss:$0 sm:$0xff]  ;;  %s2758_s4 = scalar_lea.vmem %s2017_s11, 256 }
 0x10c   :  { %p2759_p10 = scmp.ne.s32.totalorder %s2017_s11, %s2758_s4  ;;  %p2764_p12 = scmp.lt.s32.totalorder %s2758_s4, %s2758_s4 }
 0x10e   :  { %2272 = vmatpush3.bf16.msra.mxu0 %v2670_v22  ;;  %2294 = vmatpush3.bf16.msra.mxu1 %v2671_v23  ;;  %p2765_p13 = por %p2764_p12, %p2763_p11 }
 0x10f   :  { %2273 = vmatprep.subr.bf16.mxu0 %v2672_v24  ;;  %2295 = vmatprep.subr.bf16.mxu1 %v2673_v25 }
 0x110   :  { %p2766_p0 = pnand %p2765_p13, %p2759_p10 }
 0x112   :  { %2274 = vmatpush3.bf16.msra.mxu0 %v2674_v26  ;;  %2296 = vmatpush3.bf16.msra.mxu1 %v2675_v27 }
 0x113   :  { %2275 = vmatprep.subr.bf16.mxu0 %v2676_v28  ;;  %2297 = vmatprep.subr.bf16.mxu1 %v2677_v29 }
 0x116   :  { %2276 = vmatpush3.bf16.msra.mxu0 %v2678_v30  ;;  %2298 = vmatpush3.bf16.msra.mxu1 %v2679_v31 }
 0x117   :  { %2277 = vmatprep.subr.bf16.mxu0 %v2680_v32  ;;  %2299 = vmatprep.subr.bf16.mxu1 %v2681_v33 }
 0x11a   :  { %2278 = vmatpush3.bf16.msra.mxu0 %v2682_v34  ;;  %2300 = vmatpush3.bf16.msra.mxu1 %v2683_v35 }
 0x11b   :  { %2279 = vmatprep.subr.bf16.mxu0 %v2684_v36  ;;  %2301 = vmatprep.subr.bf16.mxu1 %v2685_v37 }
 0x11e   :  { %2280 = vmatpush3.bf16.msra.mxu0 %v2686_v38  ;;  %2302 = vmatpush3.bf16.msra.mxu1 %v2687_v39 }
 0x11f   :  { %2281 = vmatprep.subr.bf16.mxu0 %v2688_v40  ;;  %2303 = vmatprep.subr.bf16.mxu1 %v2689_v41 }
 0x122   :  { %2282 = vmatpush3.bf16.msra.mxu0 %v2690_v42  ;;  %2304 = vmatpush3.bf16.msra.mxu1 %v2691_v43 }
 0x1d8   :  { %v1471_v55 = vpop.f32.mrb[0].mxu0  ;;  %v1643_v56 = vpop.f32.mrb[0].mxu1 }
 0x1d9   :  { %v2311_v57 = vadd.f32 %v1471_v55, %v272_v51  ;;  %v2315_v58 = vadd.f32 %v1643_v56, %v280_v52  ;;  %v1473_v59 = vpop.f32.mrb[1].mxu0  ;;  %v1645_v60 = vpop.f32.mrb[1].mxu1 }
 0x1da   :  { %v2312_v61 = vadd.f32 %v1473_v59, %v276_v53  ;;  %v2316_v62 = vadd.f32 %v1645_v60, %v284_v54  ;;  %v1475_v63 = vpop.f32.mrb[2].mxu0  ;;  %v1647_v0 = vpop.f32.mrb[2].mxu1 }
 0x1db   :  { %v2313_v1 = vadd.f32 %v1475_v63, %v272_v51  ;;  %v2317_v2 = vadd.f32 %v1647_v0, %v280_v52  ;;  %v1477_v3 = vpop.f32.mrb[3].mxu0  ;;  %v1649_v4 = vpop.f32.mrb[3].mxu1  ;;  %v1652_v7 = vmax.f32 %v2311_v57, 0.0  ;;  %v1654_v8 = vmax.f32 %v2315_v58, 0.0 }
 0x1dc   :  { %v2314_v5 = vadd.f32 %v1477_v3, %v276_v53  ;;  %v2318_v6 = vadd.f32 %v1649_v4, %v284_v54  ;;  %v1653_v11 = vmax.f32 %v2312_v61, 0.0  ;;  %v1655_v12 = vmax.f32 %v2316_v62, 0.0 }
 0x1dd   :  { %v1656_v9 = vmax.f32 %v2313_v1, 0.0  ;;  %v1658_v10 = vmax.f32 %v2317_v2, 0.0 }
 0x1de   :  { %v1657_v13 = vmax.f32 %v2314_v5, 0.0  ;;  %v1659_v14 = vmax.f32 %v2318_v6, 0.0 }
 0x1df   :  { %v1660_v15 = vpack.c.bf16 %v1656_v9, %v1652_v7  ;;  %v1662_v16 = vpack.c.bf16 %v1658_v10, %v1654_v8 }
 0x1e0   :  { %v1661_v17 = vpack.c.bf16 %v1657_v13, %v1653_v11  ;;  %v1663_v18 = vpack.c.bf16 %v1659_v14, %v1655_v12 }
 0x1e2   :  { %1959 = vmatprep.mubr.bf16.mxu0 %v1661_v17  ;;  %2000 = vmatprep.mubr.bf16.mxu1 %v1663_v18 }
 0x1e3   :  { %1960 = vmatmul.mubr.bf16.vlgmr.msra.gmra.mrb[4].mxu0 %v1660_v15  ;;  %2001 = vmatmul.mubr.bf16.vlgmr.msra.gmra.mrb[4].mxu1 %v1662_v16 }
 0x2b6   :  { %v2283_v19 = vpop.f32.mrb[4].mxu0  ;;  %v2305_v20 = vpop.f32.mrb[4].mxu1 }
 0x2b7   :  { %v2284_v22 = vpop.f32.mrb[5].mxu0  ;;  %v2306_v23 = vpop.f32.mrb[5].mxu1 }
 0x2b8   :  { %v2285_v24 = vadd.f32 %v2284_v22, %v2283_v19  ;;  %v2307_v25 = vadd.f32 %v2306_v23, %v2305_v20  ;;  %v2286_v26 = vpop.f32.mrb[6].mxu0  ;;  %v2308_v27 = vpop.f32.mrb[6].mxu1 }
 0x2b9   :  { %v2287_v28 = vpop.f32.mrb[7].mxu0  ;;  %v2309_v29 = vpop.f32.mrb[7].mxu1 }
 0x2ba   :  { %v1962_v30 = vadd.f32 %v2285_v24, %v2234_v21  ;;  %v2288_v31 = vadd.f32 %v2287_v28, %v2286_v26  ;;  %v2310_v32 = vadd.f32 %v2309_v29, %v2308_v27 }
 0x2bc   :  { %v2003_v33 = vadd.f32 %v2307_v25, %v1962_v30  ;;  %v1965_v34 = vadd.f32 %v2288_v31, %v2234_v21 }
 0x2be   :  { %2009 = vst [vmem:[#allocation8] sm:$0xff] %v2003_v33  ;;  %v2006_v35 = vadd.f32 %v2310_v32, %v1965_v34 }
 0x2c0   :  { %2010 = vst [vmem:[#allocation8 + $0x8] sm:$0xff] %v2006_v35 }
 0x2c1   :  { %2769 = shalt.err (!%p2766_p0)
}
 0x2c2   :  { %s2770_s14 = scalar_lea.hbm %s2888_s5, 256 }
 0x2c3   :  { %p2771_p1 = scmp.ne.s32.totalorder %s2888_s5, %s2770_s14  ;;  %p2774_p2 = scmp.lt.u32.totalorder %s2770_s14, %s2888_s5 }
 0x2c5   :  { %p2776_p3 = pnand %p2774_p2, %p2771_p1 }
 0x2c7   :  { %2779 = shalt.err (!%p2776_p3)
}
 0x2c8   :  { %s2797_s18 = smov 128   ;;  %s2798_s19 = smov 8  }
 0x2c9   :  { %2022 = dma.vmem_to_hbm [thread:$0]  %s2017_s11, 256, %s2888_s5, [#allocation4], %s2797_s18, %s2797_s18, %s2798_s19  }
 0x2ca   :  { %2784 = dma.done.wait [#allocation4], 256  }
 0x2cb   :  { %2785 = vsyncadd [#allocation4], 4294967040 }
 0x2cc   :  { %2026 = vsyncpa [#allocation3], 1 }
 0x2cd   :  { %2027 = vsyncpa [#allocation6], 1 }
 0x2ce   :  { %2028 = vsyncpa [#allocation4], 1 }

</bundles_post_ra>
